<compile_context>
chip_gen: v5e
topology: v5e:2x2
jax: 0.10.0
libtpu: 0.0.40
codegen_flags: <defaults>
</compile_context>

<pallas_src>
import math
import numpy as np
import jax
import jax.numpy as jnp
from jax import lax
from jax.experimental import pallas as pl
from jax.experimental.pallas import tpu as pltpu

# ---- small config consistent with HashingMemory constraints -----------------
INPUT_DIM = 32          # input_dim
OUTPUT_DIM = 32         # output_dim
K_DIM = 8               # mem_k_dim (even, >= 2)
HEADS = 2               # mem_heads (>= 2)
KNN = 4                 # mem_knn
N_KEYS = 16             # mem_n_keys
SIZE = N_KEYS * N_KEYS  # memory size (256)
V_DIM = OUTPUT_DIM      # mem_v_dim = -1  -> v_dim = output_dim
HALF = K_DIM // 2

SCORE_COLS = HEADS * SIZE          # 512 dense combined-score columns (all heads)
TOT_COLS = SCORE_COLS + V_DIM      # 544 = scores + swilu pre-activation

VAL_DTYPE = jnp.bfloat16           # value table / value_proj fed to MXU in bf16
NEG = -1e30                        # plain Python float (not a captured jnp const)


def make_hashing_memory_kernel(tm_inner: int, n_inner: int):
    """Build the kernel for a fixed inner chunk size / chunk count (static)."""

    def compute_chunk(x, w_ref, b_ref, vals_ref, wvp_ref, bvp_ref):
        # x: (tm_inner, INPUT_DIM) f32
        iota = lax.broadcasted_iota(jnp.int32, (tm_inner, SIZE), 1)
        o = jnp.zeros((tm_inner, V_DIM), jnp.float32)

        for h in range(HEADS):                                 # HEADS == 2, unrolled
            # Per-head dense combined product-key scores: query Linear + keys +
            # candidate expansion were folded into w_big/b_big in the wrapper.
            cur = jnp.dot(x, w_ref[:, h * SIZE:(h + 1) * SIZE],
                          preferred_element_type=jnp.float32)
            cur = cur + b_ref[:, h * SIZE:(h + 1) * SIZE]      # (tm_inner, SIZE)

            m0 = jnp.max(cur, axis=-1, keepdims=True)          # top-1 score
            denom = jnp.ones((tm_inner, 1), jnp.float32)       # exp(m0 - m0) == 1
            wsum = jnp.zeros((tm_inner, SIZE), jnp.float32)    # unnormalized softmax wts
            m = m0
            e = 1.0
            for t in range(KNN):                               # iterative exact top-KNN
                if t > 0:
                    m = jnp.max(cur, axis=-1, keepdims=True)
                    e = jnp.exp(m - m0)
                    denom = denom + e
                # first (lowest flat index) position holding the current max
                pos = jnp.min(jnp.where(cur == m, iota, SIZE), axis=-1, keepdims=True)
                hit = iota == pos
                # hit positions are unique across iterations -> plain select, no add
                wsum = jnp.where(hit, e, wsum)
                if t + 1 < KNN:
                    cur = jnp.where(hit, NEG, cur)

            # EmbeddingBag("sum"): weighted value lookup == weights @ values; the
            # 1/denom softmax normalization commutes with the matmul, so it is
            # applied on the small (tm_inner, V_DIM) result, not the SIZE slab.
            o_h = jnp.dot(wsum.astype(VAL_DTYPE), vals_ref[...],
                          preferred_element_type=jnp.float32)
            o = o + o_h * pl.reciprocal(denom, approx=True)

        # swilu gate + value projection
        sw = jnp.dot(x, w_ref[:, SCORE_COLS:], preferred_element_type=jnp.float32)
        sw = sw + b_ref[:, SCORE_COLS:]
        silu = sw * pl.reciprocal(1.0 + jnp.exp(-sw), approx=True)
        gated = (o * silu).astype(VAL_DTYPE)
        out = jnp.dot(gated, wvp_ref[...], preferred_element_type=jnp.float32)
        return out + bvp_ref[...]

    def kernel(x_ref, w_ref, b_ref, vals_ref, wvp_ref, bvp_ref, out_ref):
        if n_inner == 1:
            out_ref[...] = compute_chunk(x_ref[...], w_ref, b_ref,
                                         vals_ref, wvp_ref, bvp_ref)
        else:
            # fori_loop (not a static Python loop) so each chunk's live range is
            # bounded — keeps the top-k sweep inside the 64-vreg file.
            def body(c, carry):
                r0 = pl.multiple_of(c * tm_inner, tm_inner)
                xc = x_ref[pl.ds(r0, tm_inner), :]
                out_ref[pl.ds(r0, tm_inner), :] = compute_chunk(
                    xc, w_ref, b_ref, vals_ref, wvp_ref, bvp_ref)
                return carry
            lax.fori_loop(0, n_inner, body, None)

    return kernel


def _round_up(a, b):
    return (a + b - 1) // b * b


def _pack_params(params):
    """Fold query Linear + product keys + dense KNNxKNN expansion into a single
    (INPUT_DIM, HEADS*SIZE + V_DIM) weight / bias, and cast the value table and
    value_proj weight to bf16 for the MXU (f32 accumulation in-kernel)."""
    keys = params["keys"].reshape(HEADS, 2, N_KEYS, HALF)
    wq, bq = params["wq"], params["bq"]
    # 0/1 expansion matrices: dense column c = i*N_KEYS + j; E1 copies s1[i], E2 copies s2[j]
    e1 = jnp.asarray(np.kron(np.eye(N_KEYS, dtype=np.float32),
                             np.ones((1, N_KEYS), np.float32)))   # (N_KEYS, SIZE)
    e2 = jnp.asarray(np.kron(np.ones((1, N_KEYS), np.float32),
                             np.eye(N_KEYS, dtype=np.float32)))   # (N_KEYS, SIZE)
    w_cols, b_cols = [], []
    for h in range(HEADS):
        wq_h = wq[:, h * K_DIM:(h + 1) * K_DIM]
        bq_h = bq[:, h * K_DIM:(h + 1) * K_DIM]
        k1t = keys[h, 0].T                                        # (HALF, N_KEYS)
        k2t = keys[h, 1].T
        w_cols.append((wq_h[:, :HALF] @ k1t) @ e1 + (wq_h[:, HALF:] @ k2t) @ e2)
        b_cols.append((bq_h[:, :HALF] @ k1t) @ e1 + (bq_h[:, HALF:] @ k2t) @ e2)
    w_big = jnp.concatenate(w_cols + [params["wsw"]], axis=1)     # (INPUT_DIM, 544) f32
    b_big = jnp.concatenate(b_cols + [params["bsw"]], axis=1)     # (1, 544) f32
    vals_b = params["values"].astype(VAL_DTYPE)
    wvp_b = params["wvp"].astype(VAL_DTYPE)
    return w_big, b_big, vals_b, wvp_b


def hashing_memory_forward(x, params, tm=1024, tm_inner=256):
    B, T, C = x.shape
    assert C == INPUT_DIM
    bs = B * T
    xf = x.reshape(bs, C).astype(jnp.float32)

    # Outer grid tile (multiple of tm_inner) and inner chunk (multiple of 8 sublanes).
    tm = max(8, _round_up(min(int(tm), bs), 8))
    tm_inner = max(8, (min(int(tm_inner), tm) // 8) * 8)
    tm = (tm // tm_inner) * tm_inner
    n_inner = tm // tm_inner
    bs_p = _round_up(bs, tm)
    if bs_p != bs:
        xf = jnp.pad(xf, ((0, bs_p - bs), (0, 0)))

    w_big, b_big, vals_b, wvp_b = _pack_params(params)

    kernel = make_hashing_memory_kernel(tm_inner, n_inner)
    out = pl.pallas_call(
        kernel,
        out_shape=jax.ShapeDtypeStruct((bs_p, OUTPUT_DIM), jnp.float32),
        grid=(bs_p // tm,),
        in_specs=[
            pl.BlockSpec((tm, INPUT_DIM), lambda i: (i, 0)),         # x tile
            pl.BlockSpec((INPUT_DIM, TOT_COLS), lambda i: (0, 0)),   # fused weights
            pl.BlockSpec((1, TOT_COLS), lambda i: (0, 0)),           # fused bias
            pl.BlockSpec((SIZE, V_DIM), lambda i: (0, 0)),           # values (bf16)
            pl.BlockSpec((V_DIM, OUTPUT_DIM), lambda i: (0, 0)),     # value_proj W (bf16)
            pl.BlockSpec((1, OUTPUT_DIM), lambda i: (0, 0)),         # value_proj b
        ],
        out_specs=pl.BlockSpec((tm, OUTPUT_DIM), lambda i: (i, 0)),
        compiler_params=pltpu.CompilerParams(
            dimension_semantics=("parallel",)),                      # v7x: 2 TCs
    )(xf, w_big, b_big, vals_b, wvp_b, params["bvp"])
    return out[:bs].reshape(B, T, OUTPUT_DIM)


def init_params(key):
    """Deterministic init mimicking HashingMemory.reset_parameters shapes/stats."""
    ks = jax.random.split(key, 8)
    bound = 1.0 / math.sqrt(K_DIM)
    keys_p = jax.random.uniform(ks[0], (2 * HEADS * N_KEYS, HALF), jnp.float32,
                                -bound, bound)
    values = jax.random.normal(ks[1], (SIZE, V_DIM), jnp.float32) * (V_DIM ** -0.5)
    xa = math.sqrt(6.0 / (INPUT_DIM + HEADS * K_DIM))          # xavier_uniform
    wq = jax.random.uniform(ks[2], (INPUT_DIM, HEADS * K_DIM), jnp.float32, -xa, xa)
    bb = 1.0 / math.sqrt(INPUT_DIM)
    bq = jax.random.uniform(ks[3], (1, HEADS * K_DIM), jnp.float32, -bb, bb)
    wvp = jax.random.normal(ks[4], (V_DIM, OUTPUT_DIM), jnp.float32) * (OUTPUT_DIM ** -0.5)
    bvp = jax.random.uniform(ks[5], (1, OUTPUT_DIM), jnp.float32,
                             -1.0 / math.sqrt(V_DIM), 1.0 / math.sqrt(V_DIM))
    wsw = jax.random.normal(ks[6], (INPUT_DIM, V_DIM), jnp.float32) * (OUTPUT_DIM ** -0.5)
    bsw = jax.random.uniform(ks[7], (1, V_DIM), jnp.float32, -bb, bb)
    return dict(keys=keys_p, values=values, wq=wq, bq=bq,
                wvp=wvp, bvp=bvp, wsw=wsw, bsw=bsw)


def reference_forward(x, params):
    """Pure-JAX reference mirroring the PyTorch forward (eval mode)."""
    B, T, C = x.shape
    bs = B * T
    xf = x.reshape(bs, C)
    q = (xf @ params["wq"] + params["bq"]).reshape(bs, HEADS, K_DIM)
    keys = params["keys"].reshape(HEADS, 2, N_KEYS, HALF)
    s1 = jnp.einsum('blh,lkh->blk', q[:, :, :HALF], keys[:, 0])
    s2 = jnp.einsum('blh,lkh->blk', q[:, :, HALF:], keys[:, 1])
    v1, i1 = lax.top_k(s1, KNN)
    v2, i2 = lax.top_k(s2, KNN)
    all_s = (v1[..., :, None] + v2[..., None, :]).reshape(bs, HEADS, KNN * KNN)
    all_i = (i1[..., :, None] * N_KEYS + i2[..., None, :]).reshape(bs, HEADS, KNN * KNN)
    ts, tp = lax.top_k(all_s, KNN)
    ti = jnp.take_along_axis(all_i, tp, axis=2)
    sc = jax.nn.softmax(ts, axis=-1).reshape(bs, HEADS * KNN)
    idx = ti.reshape(bs, HEADS * KNN)
    o = jnp.einsum('bk,bkv->bv', sc, params["values"][idx])
    sw = xf @ params["wsw"] + params["bsw"]
    out = (o * jax.nn.silu(sw)) @ params["wvp"] + params["bvp"]
    return out.reshape(B, T, OUTPUT_DIM)


if __name__ == "__main__":
    B, T = 2, 8
    key = jax.random.PRNGKey(0)
    kx, kp = jax.random.split(key)
    x = jax.random.normal(kx, (B, T, INPUT_DIM), jnp.float32)
    params = init_params(kp)
    ref = reference_forward(x, params)

    # Path 1: grid-tiled token axis (2 grid steps, single inner chunk each).
    out1 = jax.block_until_ready(hashing_memory_forward(x, params, tm=8))
    # Path 2: single grid step exercising the in-kernel fori_loop (2 row chunks).
    out2 = jax.block_until_ready(hashing_memory_forward(x, params, tm=16, tm_inner=8))

    for out in (out1, out2):
        assert out.shape == (B, T, OUTPUT_DIM)
        np.testing.assert_allclose(np.asarray(out), np.asarray(ref),
                                   rtol=2e-2, atol=2e-2)
    print("KERNEL_OK")
</pallas_src>

<mosaic_0001>
module attributes {stable_mosaic.version = 11 : i64} {
  func.func @kernel(%arg0: i32, %arg1: memref<8x32xf32, #tpu.memory_space<vmem>>, %arg2: memref<32x544xf32, #tpu.memory_space<vmem>>, %arg3: memref<1x544xf32, #tpu.memory_space<vmem>>, %arg4: memref<256x32xbf16, #tpu.memory_space<vmem>>, %arg5: memref<32x32xbf16, #tpu.memory_space<vmem>>, %arg6: memref<1x32xf32, #tpu.memory_space<vmem>>, %arg7: memref<8x32xf32, #tpu.memory_space<vmem>>) attributes {dimension_semantics = [#tpu.dimension_semantics<parallel>], iteration_bounds = array<i64: 2>, scalar_prefetch = 0 : i64, scratch_operands = 0 : i64, tpu.core_type = #tpu.core_type<tc>, window_params = [{transform_indices = @transform_0, window_bounds = array<i64: 8, 32>}, {pipeline_mode = #tpu.pipeline_mode<synchronous>, transform_indices = @transform_1, window_bounds = array<i64: 32, 544>}, {pipeline_mode = #tpu.pipeline_mode<synchronous>, transform_indices = @transform_2, window_bounds = array<i64: 1, 544>}, {pipeline_mode = #tpu.pipeline_mode<synchronous>, transform_indices = @transform_3, window_bounds = array<i64: 256, 32>}, {pipeline_mode = #tpu.pipeline_mode<synchronous>, transform_indices = @transform_4, window_bounds = array<i64: 32, 32>}, {pipeline_mode = #tpu.pipeline_mode<synchronous>, transform_indices = @transform_5, window_bounds = array<i64: 1, 32>}, {transform_indices = @transform_6, window_bounds = array<i64: 8, 32>}]} {
    %c0 = arith.constant 0 : index
    %c0_0 = arith.constant 0 : index
    %0 = vector.load %arg1[%c0, %c0_0] : memref<8x32xf32, #tpu.memory_space<vmem>>, vector<8x32xf32>
    %1 = tpu.iota {dimensions = array<i32: 1>} : vector<8x256xi32>
    %cst = arith.constant 0.000000e+00 : f32
    %2 = vector.broadcast %cst : f32 to vector<8x32xf32>
    %c0_1 = arith.constant 0 : index
    %c0_2 = arith.constant 0 : index
    %3 = vector.load %arg2[%c0_1, %c0_2] : memref<32x544xf32, #tpu.memory_space<vmem>>, vector<32x256xf32>
    %cst_3 = arith.constant dense<0.000000e+00> : vector<8x256xf32>
    %4 = tpu.matmul %0, %3, %cst_3 {dimension_numbers = #tpu.dot_dimension_numbers<[1], [0], [0], [1], [0, 0, 1, 1], [], []>} : vector<8x32xf32>, vector<32x256xf32>, vector<8x256xf32> -> vector<8x256xf32>
    %c0_4 = arith.constant 0 : index
    %c0_5 = arith.constant 0 : index
    %5 = vector.load %arg3[%c0_4, %c0_5] : memref<1x544xf32, #tpu.memory_space<vmem>>, vector<1x256xf32>
    %6 = vector.broadcast %5 : vector<1x256xf32> to vector<8x256xf32>
    %7 = arith.addf %4, %6 : vector<8x256xf32>
    %cst_6 = arith.constant dense<0xFF800000> : vector<8xf32>
    %8 = vector.multi_reduction <maximumf>, %7, %cst_6 [1] : vector<8x256xf32> to vector<8xf32>
    %9 = vector.shape_cast %8 : vector<8xf32> to vector<8x1xf32>
    %cst_7 = arith.constant 1.000000e+00 : f32
    %10 = vector.broadcast %cst_7 : f32 to vector<8x1xf32>
    %cst_8 = arith.constant 0.000000e+00 : f32
    %11 = vector.broadcast %cst_8 : f32 to vector<8x256xf32>
    %12 = vector.broadcast %9 : vector<8x1xf32> to vector<8x256xf32>
    %13 = arith.cmpf oeq, %7, %12 : vector<8x256xf32>
    %c256_i32 = arith.constant 256 : i32
    %14 = vector.broadcast %c256_i32 : i32 to vector<8x256xi32>
    %15 = arith.select %13, %1, %14 : vector<8x256xi1>, vector<8x256xi32>
    %cst_9 = arith.constant dense<2147483647> : vector<8xi32>
    %16 = vector.multi_reduction <minsi>, %15, %cst_9 [1] : vector<8x256xi32> to vector<8xi32>
    %17 = vector.shape_cast %16 : vector<8xi32> to vector<8x1xi32>
    %18 = vector.broadcast %17 : vector<8x1xi32> to vector<8x256xi32>
    %19 = arith.cmpi eq, %1, %18 : vector<8x256xi32>
    %cst_10 = arith.constant 1.000000e+00 : f32
    %20 = vector.broadcast %cst_10 : f32 to vector<8x256xf32>
    %21 = arith.select %19, %20, %11 : vector<8x256xi1>, vector<8x256xf32>
    %cst_11 = arith.constant -1.000000e+30 : f32
    %22 = vector.broadcast %cst_11 : f32 to vector<8x256xf32>
    %23 = arith.select %19, %22, %7 : vector<8x256xi1>, vector<8x256xf32>
    %cst_12 = arith.constant dense<0xFF800000> : vector<8xf32>
    %24 = vector.multi_reduction <maximumf>, %23, %cst_12 [1] : vector<8x256xf32> to vector<8xf32>
    %25 = vector.shape_cast %24 : vector<8xf32> to vector<8x1xf32>
    %26 = arith.subf %25, %9 : vector<8x1xf32>
    %27 = math.exp %26 : vector<8x1xf32>
    %28 = arith.addf %10, %27 : vector<8x1xf32>
    %29 = vector.broadcast %25 : vector<8x1xf32> to vector<8x256xf32>
    %30 = arith.cmpf oeq, %23, %29 : vector<8x256xf32>
    %c256_i32_13 = arith.constant 256 : i32
    %31 = vector.broadcast %c256_i32_13 : i32 to vector<8x256xi32>
    %32 = arith.select %30, %1, %31 : vector<8x256xi1>, vector<8x256xi32>
    %cst_14 = arith.constant dense<2147483647> : vector<8xi32>
    %33 = vector.multi_reduction <minsi>, %32, %cst_14 [1] : vector<8x256xi32> to vector<8xi32>
    %34 = vector.shape_cast %33 : vector<8xi32> to vector<8x1xi32>
    %35 = vector.broadcast %34 : vector<8x1xi32> to vector<8x256xi32>
    %36 = arith.cmpi eq, %1, %35 : vector<8x256xi32>
    %37 = vector.shape_cast %27 : vector<8x1xf32> to vector<8x1xf32>
    %38 = vector.broadcast %37 : vector<8x1xf32> to vector<8x256xf32>
    %39 = arith.select %36, %38, %21 : vector<8x256xi1>, vector<8x256xf32>
    %cst_15 = arith.constant -1.000000e+30 : f32
    %40 = vector.broadcast %cst_15 : f32 to vector<8x256xf32>
    %41 = arith.select %36, %40, %23 : vector<8x256xi1>, vector<8x256xf32>
    %cst_16 = arith.constant dense<0xFF800000> : vector<8xf32>
    %42 = vector.multi_reduction <maximumf>, %41, %cst_16 [1] : vector<8x256xf32> to vector<8xf32>
    %43 = vector.shape_cast %42 : vector<8xf32> to vector<8x1xf32>
    %44 = arith.subf %43, %9 : vector<8x1xf32>
    %45 = math.exp %44 : vector<8x1xf32>
    %46 = arith.addf %28, %45 : vector<8x1xf32>
    %47 = vector.broadcast %43 : vector<8x1xf32> to vector<8x256xf32>
    %48 = arith.cmpf oeq, %41, %47 : vector<8x256xf32>
    %c256_i32_17 = arith.constant 256 : i32
    %49 = vector.broadcast %c256_i32_17 : i32 to vector<8x256xi32>
    %50 = arith.select %48, %1, %49 : vector<8x256xi1>, vector<8x256xi32>
    %cst_18 = arith.constant dense<2147483647> : vector<8xi32>
    %51 = vector.multi_reduction <minsi>, %50, %cst_18 [1] : vector<8x256xi32> to vector<8xi32>
    %52 = vector.shape_cast %51 : vector<8xi32> to vector<8x1xi32>
    %53 = vector.broadcast %52 : vector<8x1xi32> to vector<8x256xi32>
    %54 = arith.cmpi eq, %1, %53 : vector<8x256xi32>
    %55 = vector.shape_cast %45 : vector<8x1xf32> to vector<8x1xf32>
    %56 = vector.broadcast %55 : vector<8x1xf32> to vector<8x256xf32>
    %57 = arith.select %54, %56, %39 : vector<8x256xi1>, vector<8x256xf32>
    %cst_19 = arith.constant -1.000000e+30 : f32
    %58 = vector.broadcast %cst_19 : f32 to vector<8x256xf32>
    %59 = arith.select %54, %58, %41 : vector<8x256xi1>, vector<8x256xf32>
    %cst_20 = arith.constant dense<0xFF800000> : vector<8xf32>
    %60 = vector.multi_reduction <maximumf>, %59, %cst_20 [1] : vector<8x256xf32> to vector<8xf32>
    %61 = vector.shape_cast %60 : vector<8xf32> to vector<8x1xf32>
    %62 = arith.subf %61, %9 : vector<8x1xf32>
    %63 = math.exp %62 : vector<8x1xf32>
    %64 = arith.addf %46, %63 : vector<8x1xf32>
    %65 = vector.broadcast %61 : vector<8x1xf32> to vector<8x256xf32>
    %66 = arith.cmpf oeq, %59, %65 : vector<8x256xf32>
    %c256_i32_21 = arith.constant 256 : i32
    %67 = vector.broadcast %c256_i32_21 : i32 to vector<8x256xi32>
    %68 = arith.select %66, %1, %67 : vector<8x256xi1>, vector<8x256xi32>
    %cst_22 = arith.constant dense<2147483647> : vector<8xi32>
    %69 = vector.multi_reduction <minsi>, %68, %cst_22 [1] : vector<8x256xi32> to vector<8xi32>
    %70 = vector.shape_cast %69 : vector<8xi32> to vector<8x1xi32>
    %71 = vector.broadcast %70 : vector<8x1xi32> to vector<8x256xi32>
    %72 = arith.cmpi eq, %1, %71 : vector<8x256xi32>
    %73 = vector.shape_cast %63 : vector<8x1xf32> to vector<8x1xf32>
    %74 = vector.broadcast %73 : vector<8x1xf32> to vector<8x256xf32>
    %75 = arith.select %72, %74, %57 : vector<8x256xi1>, vector<8x256xf32>
    %76 = arith.truncf %75 : vector<8x256xf32> to vector<8x256xbf16>
    %c0_23 = arith.constant 0 : index
    %c0_24 = arith.constant 0 : index
    %77 = vector.load %arg4[%c0_23, %c0_24] : memref<256x32xbf16, #tpu.memory_space<vmem>>, vector<256x32xbf16>
    %cst_25 = arith.constant dense<0.000000e+00> : vector<8x32xf32>
    %78 = tpu.matmul %76, %77, %cst_25 {dimension_numbers = #tpu.dot_dimension_numbers<[1], [0], [0], [1], [0, 0, 1, 1], [], []>} : vector<8x256xbf16>, vector<256x32xbf16>, vector<8x32xf32> -> vector<8x32xf32>
    %79 = tpu.reciprocal %64 {approx = true} : vector<8x1xf32> -> vector<8x1xf32>
    %80 = vector.broadcast %79 : vector<8x1xf32> to vector<8x32xf32>
    %81 = arith.mulf %78, %80 : vector<8x32xf32>
    %82 = arith.addf %2, %81 : vector<8x32xf32>
    %c0_26 = arith.constant 0 : index
    %c256 = arith.constant 256 : index
    %83 = vector.load %arg2[%c0_26, %c256] : memref<32x544xf32, #tpu.memory_space<vmem>>, vector<32x256xf32>
    %cst_27 = arith.constant dense<0.000000e+00> : vector<8x256xf32>
    %84 = tpu.matmul %0, %83, %cst_27 {dimension_numbers = #tpu.dot_dimension_numbers<[1], [0], [0], [1], [0, 0, 1, 1], [], []>} : vector<8x32xf32>, vector<32x256xf32>, vector<8x256xf32> -> vector<8x256xf32>
    %c0_28 = arith.constant 0 : index
    %c256_29 = arith.constant 256 : index
    %85 = vector.load %arg3[%c0_28, %c256_29] : memref<1x544xf32, #tpu.memory_space<vmem>>, vector<1x256xf32>
    %86 = vector.broadcast %85 : vector<1x256xf32> to vector<8x256xf32>
    %87 = arith.addf %84, %86 : vector<8x256xf32>
    %cst_30 = arith.constant dense<0xFF800000> : vector<8xf32>
    %88 = vector.multi_reduction <maximumf>, %87, %cst_30 [1] : vector<8x256xf32> to vector<8xf32>
    %89 = vector.shape_cast %88 : vector<8xf32> to vector<8x1xf32>
    %cst_31 = arith.constant 1.000000e+00 : f32
    %90 = vector.broadcast %cst_31 : f32 to vector<8x1xf32>
    %cst_32 = arith.constant 0.000000e+00 : f32
    %91 = vector.broadcast %cst_32 : f32 to vector<8x256xf32>
    %92 = vector.broadcast %89 : vector<8x1xf32> to vector<8x256xf32>
    %93 = arith.cmpf oeq, %87, %92 : vector<8x256xf32>
    %c256_i32_33 = arith.constant 256 : i32
    %94 = vector.broadcast %c256_i32_33 : i32 to vector<8x256xi32>
    %95 = arith.select %93, %1, %94 : vector<8x256xi1>, vector<8x256xi32>
    %cst_34 = arith.constant dense<2147483647> : vector<8xi32>
    %96 = vector.multi_reduction <minsi>, %95, %cst_34 [1] : vector<8x256xi32> to vector<8xi32>
    %97 = vector.shape_cast %96 : vector<8xi32> to vector<8x1xi32>
    %98 = vector.broadcast %97 : vector<8x1xi32> to vector<8x256xi32>
    %99 = arith.cmpi eq, %1, %98 : vector<8x256xi32>
    %cst_35 = arith.constant 1.000000e+00 : f32
    %100 = vector.broadcast %cst_35 : f32 to vector<8x256xf32>
    %101 = arith.select %99, %100, %91 : vector<8x256xi1>, vector<8x256xf32>
    %cst_36 = arith.constant -1.000000e+30 : f32
    %102 = vector.broadcast %cst_36 : f32 to vector<8x256xf32>
    %103 = arith.select %99, %102, %87 : vector<8x256xi1>, vector<8x256xf32>
    %cst_37 = arith.constant dense<0xFF800000> : vector<8xf32>
    %104 = vector.multi_reduction <maximumf>, %103, %cst_37 [1] : vector<8x256xf32> to vector<8xf32>
    %105 = vector.shape_cast %104 : vector<8xf32> to vector<8x1xf32>
    %106 = arith.subf %105, %89 : vector<8x1xf32>
    %107 = math.exp %106 : vector<8x1xf32>
    %108 = arith.addf %90, %107 : vector<8x1xf32>
    %109 = vector.broadcast %105 : vector<8x1xf32> to vector<8x256xf32>
    %110 = arith.cmpf oeq, %103, %109 : vector<8x256xf32>
    %c256_i32_38 = arith.constant 256 : i32
    %111 = vector.broadcast %c256_i32_38 : i32 to vector<8x256xi32>
    %112 = arith.select %110, %1, %111 : vector<8x256xi1>, vector<8x256xi32>
    %cst_39 = arith.constant dense<2147483647> : vector<8xi32>
    %113 = vector.multi_reduction <minsi>, %112, %cst_39 [1] : vector<8x256xi32> to vector<8xi32>
    %114 = vector.shape_cast %113 : vector<8xi32> to vector<8x1xi32>
    %115 = vector.broadcast %114 : vector<8x1xi32> to vector<8x256xi32>
    %116 = arith.cmpi eq, %1, %115 : vector<8x256xi32>
    %117 = vector.shape_cast %107 : vector<8x1xf32> to vector<8x1xf32>
    %118 = vector.broadcast %117 : vector<8x1xf32> to vector<8x256xf32>
    %119 = arith.select %116, %118, %101 : vector<8x256xi1>, vector<8x256xf32>
    %cst_40 = arith.constant -1.000000e+30 : f32
    %120 = vector.broadcast %cst_40 : f32 to vector<8x256xf32>
    %121 = arith.select %116, %120, %103 : vector<8x256xi1>, vector<8x256xf32>
    %cst_41 = arith.constant dense<0xFF800000> : vector<8xf32>
    %122 = vector.multi_reduction <maximumf>, %121, %cst_41 [1] : vector<8x256xf32> to vector<8xf32>
    %123 = vector.shape_cast %122 : vector<8xf32> to vector<8x1xf32>
    %124 = arith.subf %123, %89 : vector<8x1xf32>
    %125 = math.exp %124 : vector<8x1xf32>
    %126 = arith.addf %108, %125 : vector<8x1xf32>
    %127 = vector.broadcast %123 : vector<8x1xf32> to vector<8x256xf32>
    %128 = arith.cmpf oeq, %121, %127 : vector<8x256xf32>
    %c256_i32_42 = arith.constant 256 : i32
    %129 = vector.broadcast %c256_i32_42 : i32 to vector<8x256xi32>
    %130 = arith.select %128, %1, %129 : vector<8x256xi1>, vector<8x256xi32>
    %cst_43 = arith.constant dense<2147483647> : vector<8xi32>
    %131 = vector.multi_reduction <minsi>, %130, %cst_43 [1] : vector<8x256xi32> to vector<8xi32>
    %132 = vector.shape_cast %131 : vector<8xi32> to vector<8x1xi32>
    %133 = vector.broadcast %132 : vector<8x1xi32> to vector<8x256xi32>
    %134 = arith.cmpi eq, %1, %133 : vector<8x256xi32>
    %135 = vector.shape_cast %125 : vector<8x1xf32> to vector<8x1xf32>
    %136 = vector.broadcast %135 : vector<8x1xf32> to vector<8x256xf32>
    %137 = arith.select %134, %136, %119 : vector<8x256xi1>, vector<8x256xf32>
    %cst_44 = arith.constant -1.000000e+30 : f32
    %138 = vector.broadcast %cst_44 : f32 to vector<8x256xf32>
    %139 = arith.select %134, %138, %121 : vector<8x256xi1>, vector<8x256xf32>
    %cst_45 = arith.constant dense<0xFF800000> : vector<8xf32>
    %140 = vector.multi_reduction <maximumf>, %139, %cst_45 [1] : vector<8x256xf32> to vector<8xf32>
    %141 = vector.shape_cast %140 : vector<8xf32> to vector<8x1xf32>
    %142 = arith.subf %141, %89 : vector<8x1xf32>
    %143 = math.exp %142 : vector<8x1xf32>
    %144 = arith.addf %126, %143 : vector<8x1xf32>
    %145 = vector.broadcast %141 : vector<8x1xf32> to vector<8x256xf32>
    %146 = arith.cmpf oeq, %139, %145 : vector<8x256xf32>
    %c256_i32_46 = arith.constant 256 : i32
    %147 = vector.broadcast %c256_i32_46 : i32 to vector<8x256xi32>
    %148 = arith.select %146, %1, %147 : vector<8x256xi1>, vector<8x256xi32>
    %cst_47 = arith.constant dense<2147483647> : vector<8xi32>
    %149 = vector.multi_reduction <minsi>, %148, %cst_47 [1] : vector<8x256xi32> to vector<8xi32>
    %150 = vector.shape_cast %149 : vector<8xi32> to vector<8x1xi32>
    %151 = vector.broadcast %150 : vector<8x1xi32> to vector<8x256xi32>
    %152 = arith.cmpi eq, %1, %151 : vector<8x256xi32>
    %153 = vector.shape_cast %143 : vector<8x1xf32> to vector<8x1xf32>
    %154 = vector.broadcast %153 : vector<8x1xf32> to vector<8x256xf32>
    %155 = arith.select %152, %154, %137 : vector<8x256xi1>, vector<8x256xf32>
    %156 = arith.truncf %155 : vector<8x256xf32> to vector<8x256xbf16>
    %c0_48 = arith.constant 0 : index
    %c0_49 = arith.constant 0 : index
    %157 = vector.load %arg4[%c0_48, %c0_49] : memref<256x32xbf16, #tpu.memory_space<vmem>>, vector<256x32xbf16>
    %cst_50 = arith.constant dense<0.000000e+00> : vector<8x32xf32>
    %158 = tpu.matmul %156, %157, %cst_50 {dimension_numbers = #tpu.dot_dimension_numbers<[1], [0], [0], [1], [0, 0, 1, 1], [], []>} : vector<8x256xbf16>, vector<256x32xbf16>, vector<8x32xf32> -> vector<8x32xf32>
    %159 = tpu.reciprocal %144 {approx = true} : vector<8x1xf32> -> vector<8x1xf32>
    %160 = vector.broadcast %159 : vector<8x1xf32> to vector<8x32xf32>
    %161 = arith.mulf %158, %160 : vector<8x32xf32>
    %162 = arith.addf %82, %161 : vector<8x32xf32>
    %c0_51 = arith.constant 0 : index
    %c512 = arith.constant 512 : index
    %163 = vector.load %arg2[%c0_51, %c512] : memref<32x544xf32, #tpu.memory_space<vmem>>, vector<32x32xf32>
    %cst_52 = arith.constant dense<0.000000e+00> : vector<8x32xf32>
    %164 = tpu.matmul %0, %163, %cst_52 {dimension_numbers = #tpu.dot_dimension_numbers<[1], [0], [0], [1], [0, 0, 1, 1], [], []>} : vector<8x32xf32>, vector<32x32xf32>, vector<8x32xf32> -> vector<8x32xf32>
    %c0_53 = arith.constant 0 : index
    %c512_54 = arith.constant 512 : index
    %165 = vector.load %arg3[%c0_53, %c512_54] : memref<1x544xf32, #tpu.memory_space<vmem>>, vector<1x32xf32>
    %166 = vector.broadcast %165 : vector<1x32xf32> to vector<8x32xf32>
    %167 = arith.addf %164, %166 : vector<8x32xf32>
    %cst_55 = arith.constant 0.000000e+00 : f32
    %168 = vector.broadcast %cst_55 : f32 to vector<8x32xf32>
    %169 = arith.subf %168, %167 : vector<8x32xf32>
    %170 = math.exp %169 : vector<8x32xf32>
    %cst_56 = arith.constant 1.000000e+00 : f32
    %171 = vector.broadcast %cst_56 : f32 to vector<8x32xf32>
    %172 = arith.addf %171, %170 : vector<8x32xf32>
    %173 = tpu.reciprocal %172 {approx = true} : vector<8x32xf32> -> vector<8x32xf32>
    %174 = arith.mulf %167, %173 : vector<8x32xf32>
    %175 = arith.mulf %162, %174 : vector<8x32xf32>
    %176 = arith.truncf %175 : vector<8x32xf32> to vector<8x32xbf16>
    %c0_57 = arith.constant 0 : index
    %c0_58 = arith.constant 0 : index
    %177 = vector.load %arg5[%c0_57, %c0_58] : memref<32x32xbf16, #tpu.memory_space<vmem>>, vector<32x32xbf16>
    %cst_59 = arith.constant dense<0.000000e+00> : vector<8x32xf32>
    %178 = tpu.matmul %176, %177, %cst_59 {dimension_numbers = #tpu.dot_dimension_numbers<[1], [0], [0], [1], [0, 0, 1, 1], [], []>} : vector<8x32xbf16>, vector<32x32xbf16>, vector<8x32xf32> -> vector<8x32xf32>
    %c0_60 = arith.constant 0 : index
    %c0_61 = arith.constant 0 : index
    %179 = vector.load %arg6[%c0_60, %c0_61] : memref<1x32xf32, #tpu.memory_space<vmem>>, vector<1x32xf32>
    %180 = vector.broadcast %179 : vector<1x32xf32> to vector<8x32xf32>
    %181 = arith.addf %178, %180 : vector<8x32xf32>
    %c0_62 = arith.constant 0 : index
    %c0_63 = arith.constant 0 : index
    %182 = vector.load %arg7[%c0_62, %c0_63] : memref<8x32xf32, #tpu.memory_space<vmem>>, vector<8x32xf32>
    tpu.vector_store %arg7[%c0_62, %c0_63], %181 {strides = array<i32>} : memref<8x32xf32, #tpu.memory_space<vmem>>, vector<8x32xf32>,
    return
  }
  func.func @transform_0(%arg0: i32) -> (i32, i32) {
    %c0_i32 = arith.constant 0 : i32
    %c0_i32_0 = arith.constant 0 : i32
    return %arg0, %c0_i32 : i32, i32
  }
  func.func @transform_1(%arg0: i32) -> (i32, i32) {
    %c0_i32 = arith.constant 0 : i32
    %c0_i32_0 = arith.constant 0 : i32
    %c0_i32_1 = arith.constant 0 : i32
    return %c0_i32, %c0_i32_0 : i32, i32
  }
  func.func @transform_2(%arg0: i32) -> (i32, i32) {
    %c0_i32 = arith.constant 0 : i32
    %c0_i32_0 = arith.constant 0 : i32
    %c0_i32_1 = arith.constant 0 : i32
    return %c0_i32, %c0_i32_0 : i32, i32
  }
  func.func @transform_3(%arg0: i32) -> (i32, i32) {
    %c0_i32 = arith.constant 0 : i32
    %c0_i32_0 = arith.constant 0 : i32
    %c0_i32_1 = arith.constant 0 : i32
    return %c0_i32, %c0_i32_0 : i32, i32
  }
  func.func @transform_4(%arg0: i32) -> (i32, i32) {
    %c0_i32 = arith.constant 0 : i32
    %c0_i32_0 = arith.constant 0 : i32
    %c0_i32_1 = arith.constant 0 : i32
    return %c0_i32, %c0_i32_0 : i32, i32
  }
  func.func @transform_5(%arg0: i32) -> (i32, i32) {
    %c0_i32 = arith.constant 0 : i32
    %c0_i32_0 = arith.constant 0 : i32
    %c0_i32_1 = arith.constant 0 : i32
    return %c0_i32, %c0_i32_0 : i32, i32
  }
  func.func @transform_6(%arg0: i32) -> (i32, i32) {
    %c0_i32 = arith.constant 0 : i32
    %c0_i32_0 = arith.constant 0 : i32
    return %arg0, %c0_i32 : i32, i32
  }
}

</mosaic_0001>

<bundles_post_ra>
// kernel: tpu_custom_call.1
= control target key start
LH: loop header
LB: loop body
LE: loop exit
PB: predicated region body
PF: predicated region fallthrough
CT: control target
= control target key end

     0   :  { %11 = vsyncpa [#allocation3], 0  ;;  %s1890_s0 = inlined_call_operand.hbm [shape: f32[16,32], index: 0, kind: input, shape index: {}]   ;;  %s1891_s1 = inlined_call_operand.vmem [shape: f32[32,544], index: 1, kind: input, shape index: {}]   ;;  %s1892_s2 = inlined_call_operand.hbm [shape: f32[1,544], index: 2, kind: input, shape index: {}]   ;;  %s1893_s3 = inlined_call_operand.vmem [shape: bf16[256,32], index: 3, kind: input, shape index: {}]   ;;  %s1894_s4 = inlined_call_operand.hbm [shape: bf16[32,32], index: 4, kind: input, shape index: {}]   ;;  %s1895_s5 = inlined_call_operand.vmem [shape: f32[1,32], index: 5, kind: input, shape index: {}]   ;;  %s1896_s6 = inlined_call_operand.hbm [shape: f32[16,32], index: 6, kind: output, shape index: {}]  }
   0x1   :  { %13 = vsyncpa [#allocation3 + $0x1], 0 }
   0x2   :  { %14 = vsyncpa [#allocation6], 0 }
   0x3   :  { %15 = vsyncpa [#allocation4], 0 }
   0x4   :  { %17 = vsyncpa [#allocation4 + $0x1], 0  ;;  %s1443_s21 = smov 0   ;;  %s1445_s22 = smov 0  }
   0x5   :  { %s1447_s23 = smov 0   ;;  %s1449_s24 = smov 0  }
   0x6 LB: > { %s1464_s25 = sadd.s32 4294967295, %s1401_s24   ;;  %s1037_s26 = sadd.s32 4294967294, %s1401_s24   ;;  %s1401_s24 = sphi %s1449_s24, %s1906_s24   ;;  %s1397_s23 = sphi %s1447_s23, %s1905_s23   ;;  %s1393_s22 = sphi %s1445_s22, %s1904_s22   ;;  %s1389_s21 = sphi %s1443_s21, %s1903_s21  }
   0x7   : > { %p43_p0 = scmp.ne.s32.totalorder %s1393_s22, %s1389_s21  ;;  %p44_p1 = scmp.eq.s32.totalorder %s1464_s25, 0 }
   0x8   : > { %p172_p2 = scmp.eq.s32.totalorder %s1464_s25, 1  ;;  %p178_p3 = scmp.eq.s32.totalorder %s1037_s26, 1 }
   0x9   : > { %p1473_p4 = por %p44_p1, %p43_p0  ;;  %p1038_p5 = scmp.ge.s32.totalorder %s1401_s24, 1 }
   0xa   : > { %p1478_p6 = por %p178_p3, %p43_p0  ;;  %p185_p7 = scmp.lt.s32.totalorder %s1401_s24, 3 }
   0xb   : > { %s200_s7 = sshll.u32 %s1892_s2, 4  ;;  %s1403_s9 = smov [#allocation5]   ;;  %s201_s7 = int_to_ptr.hbm [resolvable:$true] %s200_s7 }
   0xc   : > { %p1486_p8 = pnand %p1038_p5, %p185_p7  ;;  %s202_s10 = sshll.u32 %s1403_s9, 4  ;;  %s203_s10 = int_to_ptr.vmem [resolvable:$true] %s202_s10 }
   0xd   : > { %s214_s13 = sshll.u32 %s1894_s4, 4  ;;  %s1404_s14 = smov [#allocation7]   ;;  %s215_s13 = int_to_ptr.hbm [resolvable:$true] %s214_s13 }
   0xe   : > { %p1161_p10 = pneg %p1486_p8  ;;  %s216_s15 = sshll.u32 %s1404_s14, 4  ;;  %s217_s15 = int_to_ptr.vmem [resolvable:$true] %s216_s15 }
   0xf   : > { %s1405_s16 = smov 64   ;;  %s1406_s17 = smov 4  }
  0x10   : > { %p1162_p11 = pnand %p1161_p10, %p44_p1  ;;  %s1499_s18 = sadd.s32 1, %s1401_s24  }
  0x11   : > { %s27_s19 = ssub.s32 %s1401_s24, %s1499_s18  ;;  %s30_s20 = sadd.s32 1, %s1397_s23 }
  0x12   : > { %1164 = dma.hbm_to_vmem [thread:$0]  (!%p1162_p11), %s201_s7, 80, %s203_s10, [#allocation6]  }
  0x13   : > { %1167 = dma.hbm_to_vmem [thread:$0]  (!%p1162_p11), %s215_s13, 256, %s217_s15, [#allocation6], %s1405_s16, %s1405_s16, %s1406_s17  }
  0x14   : > { %p28_p12 = scmp.eq.s32.totalorder %s27_s19, 0  ;;  %p37_p13 = scmp.ne.s32.totalorder %s1397_s23, %s1393_s22 }
  0x15   : > { %p38_p0 = scmp.eq.s32.totalorder %s1401_s24, 0  ;;  %p1178_p7 = scmp.lt.s32.totalorder %s1401_s24, 2 }
  0x16   : > { %s1508_s26 = scalar_select %p28_p12, %s1397_s23, %s30_s20  }
  0x17   : > { %p39_p3 = por %p38_p0, %p37_p13  ;;  %p1512_p5 = por %p172_p2, %p37_p13 }
  0x18   : > { %s233_s30 = sand.u32 1, %s1397_s23   ;;  %s1043_s9 = sshll.u32 %s1401_s24, 3 }
  0x19   : > { %s1042_s7 = sshll.u32 %s233_s30, 3  ;;  %s241_s12 = scalar_lea.hbm %s1890_s0, %s1043_s9 }
  0x1a   : > { %s237_s13 = scalar_lea.vmem [#allocation2], %s1042_s7  ;;  %s243_s15 = sshll.u32 %s241_s12, 4  ;;  %s244_s15 = int_to_ptr.hbm [resolvable:$true] %s243_s15 }
  0x1b   : > { %s245_s14 = sshll.u32 %s237_s13, 4  ;;  %p1522_p10 = pnand %p1178_p7, %p39_p3  ;;  %s246_s14 = int_to_ptr.vmem [resolvable:$true] %s245_s14 }
  0x1c   : > { %s234_s17 = scalar_lea.sflag [#allocation3], %s233_s30  ;;  %s1301_s19 = sshra.s32 %s244_s15, 4  ;;  %s1302_s19 = int_to_ptr.hbm [resolvable:$true] %s1301_s19 }
  0x1d   : > { %s1303_s20 = scalar_lea.hbm %s1302_s19, 8  ;;  %p1305_p11 = pneg %p1522_p10 }
  0x1e   : > { %p1304_p2 = scmp.ne.s32.totalorder %s1302_s19, %s1303_s20  ;;  %s1308_s10 = scalar_lea.hbm %s1890_s0, 16 }
  0x1f   : > { %p1309_p0 = scmp.lt.s32.totalorder %s1302_s19, %s1890_s0  ;;  %p1310_p3 = scmp.lt.s32.totalorder %s1308_s10, %s1303_s20 }
  0x20   : > { %p1306_p12 = pnand %p1305_p11, %p1304_p2 }
  0x21   : > { %p1311_p7 = por %p1310_p3, %p1309_p0 }
  0x22   : > { %p1307_p13 = pneg %p1306_p12 }
  0x24   : > { %p1312_p9 = pnand %p1311_p7, %p1307_p13 }
  0x26   : > { %1315 = shalt.err (!%p1312_p9)
}
  0x27   : > { %1171 = dma.hbm_to_vmem [thread:$0]  (!%p1522_p10), %s244_s15, 128, %s246_s14, %s234_s17  }
  0x28   : > { %254 = sbr.rel (%p1486_p8) target bundleno = 1966 (0x7ae), region = 44  ;;  %s1539_s30 = sand.u32 (!%p1486_p8), 1, %s1393_s22  }
  0x29   : > { %s1045_s13 = sshll.u32 (!%p1486_p8), %s1539_s30, 3  ;;  %s257_s9 = scalar_lea.sflag (!%p1486_p8), [#allocation3], %s1539_s30 }
  0x2a   : > { %s260_s19 = scalar_lea.vmem (!%p1486_p8), [#allocation2], %s1045_s13 }
  0x2d   : > { %1376 = dma.done.wait (%p1473_p4), %s257_s9, 128  }
  0x2e   : > { %1378 = vsyncadd (%p1473_p4), %s257_s9, 4294967168 }
  0x2f   : > { %1380 = dma.done.wait (%p44_p1), [#allocation6], 336  }
  0x30   : > { %1382 = vsyncadd (%p44_p1), [#allocation6], 4294966960  ;;  %v311_v0 = vld [vmem:[%s1891_s1 + $0x78] sm:$0xff]  ;;  %v312_v1 = vld [vmem:[%s1891_s1 + $0x80] sm:$0xff]  ;;  %vm319_vm0 = vcmask 261120   ;;  %v302_v33 = vlaneseq  ;;  %s1128_s10 = sshll.u32 %s1464_s25, 3 }
  0x31   : > { %v309_v2 = vld [vmem:[%s1891_s1 + $0x50] sm:$0xff]  ;;  %335 = vmatpush.msra.mxu0 %v311_v0  ;;  %355 = vmatpush.msra.mxu1 %v312_v1  ;;  %v310_v3 = vld [vmem:[%s1891_s1 + $0x58] sm:$0xff]  ;;  %v307_v4 = vld [vmem:[%s1891_s1 + $0x28] sm:$0xff]  ;;  %s943_s12 = scalar_lea.hbm %s1896_s6, %s1128_s10  ;;  %s299_s14 = scalar_lea.vmem [#allocation8], %s1045_s13 }
  0x32   : > { %v308_v5 = vld [vmem:[%s1891_s1 + $0x30] sm:$0xff]  ;;  %v305_v6 = vld [vmem:[%s1891_s1] sm:$0xff]  ;;  %v306_v7 = vld [vmem:[%s1891_s1 + $0x8] sm:$0xff]  ;;  %v1611_v34 = vand.u32 127, %v302_v33  ;;  %s945_s15 = sshll.u32 %s299_s14, 4  ;;  %s947_s16 = sshll.u32 %s943_s12, 4  ;;  %s946_s15 = int_to_ptr.vmem [resolvable:$true] %s945_s15  ;;  %s948_s16 = int_to_ptr.hbm [resolvable:$true] %s947_s16 }
  0x33   : > { %336 = vmatpush.msra.mxu0 %v309_v2  ;;  %356 = vmatpush.msra.mxu1 %v310_v3  ;;  %v1577_v8 = vld [vmem:[%s260_s19] sm:$0xff]  ;;  %v655_v10 = vld [vmem:[%s1891_s1 + $0x90] sm:$0xff]  ;;  %v650_v13 = vld [vmem:[%s1891_s1 + $0x38] sm:$0xff]  ;;  %s933_s25 = scalar_lea.sflag [#allocation4], %s1539_s30  ;;  %s1345_s17 = sshra.s32 %s948_s16, 4  ;;  %s1346_s17 = int_to_ptr.hbm [resolvable:$true] %s1345_s17 }
  0x34   : > { %v654_v9 = vld [vmem:[%s1891_s1 + $0x88] sm:$0xff]  ;;  %v652_v11 = vld [vmem:[%s1891_s1 + $0x60] sm:$0xff]  ;;  %v648_v15 = vld [vmem:[%s1891_s1 + $0x10] sm:$0xff]  ;;  %v1614_v35 = vadd.s32 128, %v1611_v34  ;;  %s1347_s20 = scalar_lea.hbm %s1346_s17, 8  ;;  %s1351_s13 = scalar_lea.hbm %s1896_s6, 16 }
  0x35   : > { %337 = vmatpush.msra.mxu0 %v307_v4  ;;  %357 = vmatpush.msra.mxu1 %v308_v5  ;;  %v653_v12 = vld [vmem:[%s1891_s1 + $0x68] sm:$0xff]  ;;  %v651_v14 = vld [vmem:[%s1891_s1 + $0x40] sm:$0xff]  ;;  %v649_v16 = vld [vmem:[%s1891_s1 + $0x18] sm:$0xff]  ;;  %p1348_p1 = scmp.ne.s32.totalorder %s1346_s17, %s1347_s20  ;;  %p1352_p9 = scmp.lt.s32.totalorder %s1346_s17, %s1896_s6 }
  0x36   : > { %v313_v17 = vld [vmem:[#allocation5] sm:$0x3]  ;;  %v656_v24 = vld [vmem:[#allocation5 + $0x2] sm:$0x3]  ;;  %p1353_p10 = scmp.lt.s32.totalorder %s1351_s13, %s1347_s20 }
  0x37   : > { %338 = vmatpush.msra.mxu0 %v305_v6  ;;  %358 = vmatpush.msra.mxu1 %v306_v7  ;;  %v315_v18 = vperm.slane %v313_v17, 0  ;;  %v316_v19 = vperm.slane %v313_v17, 1  ;;  %v658_v26 = vperm.slane %v656_v24, 0  ;;  %v659_v27 = vperm.slane %v656_v24, 1  ;;  %p1349_p4 = pnand %p1348_p1, %p1512_p5 }
  0x38   : > { %1049 = vmatmul.msk.f32.vlgmr.msra.gmra.mxu0 %vm319_vm0, %v1577_v8  ;;  %1050 = vmatmul.msk.f32.vlgmr.msra.gmra.mxu1 %vm319_vm0, %v1577_v8  ;;  %p1354_p2 = por %p1353_p10, %p1352_p9 }
  0x39   : > { %674 = vmatpush.msrb.mxu0 %v654_v9  ;;  %694 = vmatpush.msrb.mxu1 %v655_v10  ;;  %p1350_p8 = pneg %p1349_p4 }
  0x3b   : > { %675 = vmatpush.msrb.mxu0 %v652_v11  ;;  %695 = vmatpush.msrb.mxu1 %v653_v12  ;;  %p1355_p11 = pnand %p1354_p2, %p1350_p8 }
  0x3d   : > { %676 = vmatpush.msrb.mxu0 %v650_v13  ;;  %696 = vmatpush.msrb.mxu1 %v651_v14 }
  0x3f   : > { %677 = vmatpush.msrb.mxu0 %v648_v15  ;;  %697 = vmatpush.msrb.mxu1 %v649_v16 }
  0x40   : > { %1115 = vmatmul.msk.f32.vlgmr.msrb.gmra.mxu0 %vm319_vm0, %v1577_v8  ;;  %1116 = vmatmul.msk.f32.vlgmr.msrb.gmra.mxu1 %vm319_vm0, %v1577_v8 }
  0xb5   : > { %v340_v20 = vpop.f32.mrf.mxu0  ;;  %v360_v21 = vpop.f32.mrf.mxu1 }
  0xb6   : > { %v341_v22 = vadd.f32 %v340_v20, %v315_v18  ;;  %v361_v23 = vadd.f32 %v360_v21, %v316_v19 }
  0xb8   : > { %v363_v25 = vmax.f32 %v341_v22, %v361_v23 }
  0xba   : > { %364 = vmax.xlane.f32.xlu0 %v363_v25 }
  0xbd   : > { %v679_v28 = vpop.f32.mrf.mxu0  ;;  %v699_v29 = vpop.f32.mrf.mxu1 }
  0xbe   : > { %v680_v30 = vadd.f32 %v679_v28, %v658_v26  ;;  %v700_v31 = vadd.f32 %v699_v29, %v659_v27 }
  0xc0   : > { %v702_v32 = vmax.f32 %v680_v30, %v700_v31 }
  0xc2   : > { %703 = vmax.xlane.f32.xlu0 %v702_v32 }
 0x12d   : > { %v1616_v36 = vpop.xlane.xlu0 %364 }
 0x12e   : > { %vm366_vm1 = vcmp.eq.f32.partialorder %v341_v22, %v1616_v36  ;;  %vm367_vm2 = vcmp.eq.f32.partialorder %v361_v23, %v1616_v36 }
 0x12f   : > { %v368_v37 = vsel %vm366_vm1, %v1611_v34, 256  ;;  %v369_v38 = vsel %vm367_vm2, %v1614_v35, 256 }
 0x130   : > { %vm370_vm3 = vcmp.lt.s32.totalorder %v368_v37, %v369_v38 }
 0x131   : > { %v371_v39 = vsel %vm370_vm3, %v368_v37, %v369_v38 }
 0x132   : > { %v373_v40 = vshra.s32 %v371_v39, 16  ;;  %v372_v48 = vand.u32 65535, %v371_v39 }
 0x134   : > { %v375_v41 = vcvt.s32.f32 %v373_v40  ;;  %v374_v50 = vcvt.s32.f32 %v372_v48 }
 0x135   : > { %v1622_v42 = vpop.xlane.xlu0 %703 }
 0x136   : > { %376 = vmin.xlane.f32.xlu1 %v375_v41  ;;  %vm705_vm4 = vcmp.eq.f32.partialorder %v680_v30, %v1622_v42  ;;  %vm706_vm5 = vcmp.eq.f32.partialorder %v700_v31, %v1622_v42 }
 0x137   : > { %v707_v43 = vsel %vm705_vm4, %v1611_v34, 256  ;;  %v708_v44 = vsel %vm706_vm5, %v1614_v35, 256 }
 0x138   : > { %vm709_vm6 = vcmp.lt.s32.totalorder %v707_v43, %v708_v44 }
 0x139   : > { %v710_v45 = vsel %vm709_vm6, %v707_v43, %v708_v44 }
 0x13a   : > { %v712_v46 = vshra.s32 %v710_v45, 16  ;;  %v711_v52 = vand.u32 65535, %v710_v45 }
 0x13c   : > { %v714_v47 = vcvt.s32.f32 %v712_v46  ;;  %v713_v54 = vcvt.s32.f32 %v711_v52 }
 0x13e   : > { %715 = vmin.xlane.f32.xlu1 %v714_v47 }
 0x1a9   : > { %v377_v49 = vpop.xlane.xlu1 %376 }
 0x1aa   : > { %vm378_vm7 = vcmp.eq.f32.partialorder %v375_v41, %v377_v49  ;;  %v383_v56 = vcvt.f32.s32 %v377_v49  ;;  %v1407_v41 = vmov 0.0  }
 0x1ab   : > { %v379_v51 = vsel %vm378_vm7, %v374_v50, inf }
 0x1ac   : > { %380 = vmin.xlane.f32.xlu2 %v379_v51  ;;  %v384_v58 = vshll.u32 %v383_v56, 16 }
 0x1b1   : > { %v716_v53 = vpop.xlane.xlu1 %715 }
 0x1b2   : > { %vm717_vm8 = vcmp.eq.f32.partialorder %v714_v47, %v716_v53  ;;  %v722_v61 = vcvt.f32.s32 %v716_v53 }
 0x1b3   : > { %v718_v55 = vsel %vm717_vm8, %v713_v54, inf }
 0x1b4   : > { %719 = vmin.xlane.f32.xlu2 %v718_v55  ;;  %v723_v2 = vshll.u32 %v722_v61, 16 }
 0x21f   : > { %v381_v57 = vpop.xlane.xlu2 %380 }
 0x220   : > { %v382_v59 = vcvt.f32.s32 %v381_v57 }
 0x222   : > { %v1628_v60 = vadd.s32 %v384_v58, %v382_v59 }
 0x224   : > { %vm386_vm9 = vcmp.eq.s32.totalorder %v1611_v34, %v1628_v60  ;;  %vm387_vm10 = vcmp.eq.s32.totalorder %v1614_v35, %v1628_v60 }
 0x225   : > { %v1637_v62 = vsel %vm386_vm9, -1e+30, %v341_v22  ;;  %v1642_v63 = vsel %vm387_vm10, -1e+30, %v361_v23  ;;  %v388_v43 = vsel %vm386_vm9, 1.0, %v1407_v41  ;;  %v389_v45 = vsel %vm387_vm10, 1.0, %v1407_v41 }
 0x226   : > { %v392_v0 = vmax.f32 %v1637_v62, %v1642_v63 }
 0x227   : > { %v720_v1 = vpop.xlane.xlu2 %719 }
 0x228   : > { %v721_v3 = vcvt.f32.s32 %v720_v1  ;;  %393 = vmax.xlane.f32.xlu0 %v392_v0 }
 0x22a   : > { %v1646_v4 = vadd.s32 %v723_v2, %v721_v3 }
 0x22c   : > { %vm725_vm11 = vcmp.eq.s32.totalorder %v1611_v34, %v1646_v4  ;;  %vm726_vm12 = vcmp.eq.s32.totalorder %v1614_v35, %v1646_v4 }
 0x22d   : > { %v1655_v5 = vsel %vm725_vm11, -1e+30, %v680_v30  ;;  %v1660_v6 = vsel %vm726_vm12, -1e+30, %v700_v31  ;;  %v727_v57 = vsel %vm725_vm11, 1.0, %v1407_v41  ;;  %v728_v58 = vsel %vm726_vm12, 1.0, %v1407_v41 }
 0x22e   : > { %v731_v7 = vmax.f32 %v1655_v5, %v1660_v6 }
 0x230   : > { %732 = vmax.xlane.f32.xlu1 %v731_v7 }
 0x29b   : > { %v394_v9 = vpop.xlane.xlu0 %393 }
 0x29c   : > { %vm399_vm13 = vcmp.eq.f32.partialorder %v1637_v62, %v394_v9  ;;  %vm400_vm14 = vcmp.eq.f32.partialorder %v1642_v63, %v394_v9  ;;  %v395_v29 = vsub.f32 %v394_v9, %v1616_v36 }
 0x29d   : > { %v401_v10 = vsel %vm399_vm13, %v1611_v34, 256  ;;  %v402_v11 = vsel %vm400_vm14, %v1614_v35, 256 }
 0x29e   : > { %vm403_vm15 = vcmp.lt.s32.totalorder %v401_v10, %v402_v11  ;;  %v396_v30 = vmul.f32 1.442695, %v395_v29 }
 0x29f   : > { %v404_v12 = vsel %vm403_vm15, %v401_v10, %v402_v11 }
 0x2a0   : > { %v406_v13 = vshra.s32 %v404_v12, 16  ;;  %v405_v21 = vand.u32 65535, %v404_v12  ;;  %1221 = vpow2.f32 %v396_v30 }
 0x2a2   : > { %v408_v14 = vcvt.s32.f32 %v406_v13  ;;  %v407_v23 = vcvt.s32.f32 %v405_v21 }
 0x2a3   : > { %v733_v15 = vpop.xlane.xlu1 %732 }
 0x2a4   : > { %vm738_vm1 = vcmp.eq.f32.partialorder %v1655_v5, %v733_v15  ;;  %vm739_vm2 = vcmp.eq.f32.partialorder %v1660_v6, %v733_v15  ;;  %409 = vmin.xlane.f32.xlu2 %v408_v14  ;;  %v734_v32 = vsub.f32 %v733_v15, %v1622_v42 }
 0x2a5   : > { %v740_v16 = vsel %vm738_vm1, %v1611_v34, 256  ;;  %v741_v17 = vsel %vm739_vm2, %v1614_v35, 256 }
 0x2a6   : > { %vm742_vm3 = vcmp.lt.s32.totalorder %v740_v16, %v741_v17  ;;  %v735_v39 = vmul.f32 1.442695, %v734_v32  ;;  %v1677_v44 = vpop.eup %1221 }
 0x2a7   : > { %v743_v18 = vsel %vm742_vm3, %v740_v16, %v741_v17 }
 0x2a8   : > { %v745_v19 = vshra.s32 %v743_v18, 16  ;;  %v744_v25 = vand.u32 65535, %v743_v18  ;;  %1223 = vpow2.f32 %v735_v39 }
 0x2aa   : > { %v747_v20 = vcvt.s32.f32 %v745_v19  ;;  %v746_v27 = vcvt.s32.f32 %v744_v25 }
 0x2ac   : > { %748 = vmin.xlane.f32.xlu0 %v747_v20 }
 0x2ae   : > { %v1698_v56 = vpop.eup %1223 }
 0x317   : > { %v410_v22 = vpop.xlane.xlu2 %409 }
 0x318   : > { %vm411_vm4 = vcmp.eq.f32.partialorder %v408_v14, %v410_v22  ;;  %v416_v31 = vcvt.f32.s32 %v410_v22 }
 0x319   : > { %v412_v24 = vsel %vm411_vm4, %v407_v23, inf }
 0x31a   : > { %413 = vmin.xlane.f32.xlu1 %v412_v24  ;;  %v417_v37 = vshll.u32 %v416_v31, 16 }
 0x31f   : > { %v749_v26 = vpop.xlane.xlu0 %748 }
 0x320   : > { %vm750_vm5 = vcmp.eq.f32.partialorder %v747_v20, %v749_v26  ;;  %v755_v46 = vcvt.f32.s32 %v749_v26 }
 0x321   : > { %v751_v28 = vsel %vm750_vm5, %v746_v27, inf }
 0x322   : > { %752 = vmin.xlane.f32.xlu2 %v751_v28  ;;  %v756_v53 = vshll.u32 %v755_v46, 16 }
 0x38d   : > { %v414_v33 = vpop.xlane.xlu1 %413 }
 0x38e   : > { %v415_v38 = vcvt.f32.s32 %v414_v33 }
 0x390   : > { %v418_v40 = vadd.s32 %v417_v37, %v415_v38 }
 0x392   : > { %vm419_vm6 = vcmp.eq.s32.totalorder %v1611_v34, %v418_v40  ;;  %vm420_vm7 = vcmp.eq.s32.totalorder %v1614_v35, %v418_v40 }
 0x393   : > { %v1685_v47 = vsel %vm419_vm6, -1e+30, %v1637_v62  ;;  %v1688_v48 = vsel %vm420_vm7, -1e+30, %v1642_v63  ;;  %v1691_v49 = vsel %vm419_vm6, %v1677_v44, %v388_v43  ;;  %v1694_v50 = vsel %vm420_vm7, %v1677_v44, %v389_v45 }
 0x394   : > { %v425_v51 = vmax.f32 %v1685_v47, %v1688_v48 }
 0x395   : > { %v753_v52 = vpop.xlane.xlu2 %752 }
 0x396   : > { %v754_v54 = vcvt.f32.s32 %v753_v52  ;;  %426 = vmax.xlane.f32.xlu0 %v425_v51 }
 0x398   : > { %v757_v55 = vadd.s32 %v756_v53, %v754_v54 }
 0x39a   : > { %vm758_vm8 = vcmp.eq.s32.totalorder %v1611_v34, %v757_v55  ;;  %vm759_vm9 = vcmp.eq.s32.totalorder %v1614_v35, %v757_v55 }
 0x39b   : > { %v1709_v59 = vsel %vm758_vm8, %v1698_v56, %v727_v57  ;;  %v1712_v60 = vsel %vm759_vm9, %v1698_v56, %v728_v58  ;;  %v1715_v61 = vsel %vm758_vm8, -1e+30, %v1655_v5  ;;  %v1718_v62 = vsel %vm759_vm9, -1e+30, %v1660_v6 }
 0x39c   : > { %v764_v63 = vmax.f32 %v1715_v61, %v1718_v62 }
 0x39e   : > { %765 = vmax.xlane.f32.xlu1 %v764_v63 }
 0x409   : > { %v427_v0 = vpop.xlane.xlu0 %426 }
 0x40a   : > { %vm432_vm10 = vcmp.eq.f32.partialorder %v1685_v47, %v427_v0  ;;  %vm433_vm11 = vcmp.eq.f32.partialorder %v1688_v48, %v427_v0  ;;  %v428_v21 = vsub.f32 %v427_v0, %v1616_v36 }
 0x40b   : > { %v434_v1 = vsel %vm432_vm10, %v1611_v34, 256  ;;  %v435_v2 = vsel %vm433_vm11, %v1614_v35, 256 }
 0x40c   : > { %vm436_vm12 = vcmp.lt.s32.totalorder %v434_v1, %v435_v2  ;;  %v429_v22 = vmul.f32 1.442695, %v428_v21 }
 0x40d   : > { %v437_v3 = vsel %vm436_vm12, %v434_v1, %v435_v2  ;;  %v1138_v1 = vld [vmem:[%s1893_s3 + $0x38] sm:$0xff] }
 0x40e   : > { %v439_v4 = vshra.s32 %v437_v3, 16  ;;  %v438_v13 = vand.u32 65535, %v437_v3  ;;  %1225 = vpow2.f32 %v429_v22  ;;  %v1146_v2 = vld [vmem:[%s1893_s3 + $0x78] sm:$0xff]  ;;  %619 = vmatpush.bf16.msra.mxu2 %v1138_v1  ;;  %v1137_v3 = vld [vmem:[%s1893_s3 + $0x30] sm:$0xff]  ;;  %830 = vmatpush.bf16.msra.mxu0 %v1138_v1  ;;  %v1132_v22 = vld [vmem:[%s1893_s3 + $0x8] sm:$0xff] }
 0x40f   : > { %632 = vmatpush.bf16.msra.mxu3 %v1146_v2  ;;  %843 = vmatpush.bf16.msra.mxu1 %v1146_v2  ;;  %v1148_v2 = vld [vmem:[#allocation7 + $0x8] sm:$0xff] }
 0x410   : > { %v441_v5 = vcvt.s32.f32 %v439_v4  ;;  %v440_v15 = vcvt.s32.f32 %v438_v13  ;;  %v1145_v4 = vld [vmem:[%s1893_s3 + $0x70] sm:$0xff] }
 0x411   : > { %v766_v7 = vpop.xlane.xlu1 %765  ;;  %v1133_v13 = vld [vmem:[%s1893_s3 + $0x10] sm:$0xff] }
 0x412   : > { %vm771_vm13 = vcmp.eq.f32.partialorder %v1715_v61, %v766_v7  ;;  %vm772_vm14 = vcmp.eq.f32.partialorder %v1718_v62, %v766_v7  ;;  %442 = vmin.xlane.f32.xlu2 %v441_v5  ;;  %v767_v24 = vsub.f32 %v766_v7, %v1622_v42  ;;  %620 = vmatpush.bf16.msra.mxu2 %v1137_v3  ;;  %v1144_v7 = vld [vmem:[%s1893_s3 + $0x68] sm:$0xff] }
 0x413   : > { %v773_v6 = vsel %vm771_vm13, %v1611_v34, 256  ;;  %v774_v9 = vsel %vm772_vm14, %v1614_v35, 256  ;;  %633 = vmatpush.bf16.msra.mxu3 %v1145_v4  ;;  %831 = vmatpush.bf16.msra.mxu0 %v1137_v3 }
 0x414   : > { %vm775_vm15 = vcmp.lt.s32.totalorder %v773_v6, %v774_v9  ;;  %v768_v28 = vmul.f32 1.442695, %v767_v24  ;;  %v1732_v30 = vpop.eup %1225  ;;  %844 = vmatpush.bf16.msra.mxu1 %v1145_v4  ;;  %v1131_v24 = vld [vmem:[%s1893_s3] sm:$0xff] }
 0x415   : > { %v776_v10 = vsel %vm775_vm15, %v773_v6, %v774_v9  ;;  %v1135_v6 = vld [vmem:[%s1893_s3 + $0x20] sm:$0xff] }
 0x416   : > { %v778_v11 = vshra.s32 %v776_v10, 16  ;;  %v777_v17 = vand.u32 65535, %v776_v10  ;;  %1227 = vpow2.f32 %v768_v28  ;;  %v1143_v9 = vld [vmem:[%s1893_s3 + $0x60] sm:$0xff]  ;;  %v1134_v10 = vld [vmem:[%s1893_s3 + $0x18] sm:$0xff]  ;;  %v860_v28 = vld [vmem:[%s1891_s1 + $0x48] sm:$0xff] }
 0x417   : > { %634 = vmatpush.bf16.msra.mxu3 %v1144_v7 }
 0x418   : > { %v780_v12 = vcvt.s32.f32 %v778_v11  ;;  %v779_v19 = vcvt.s32.f32 %v777_v17  ;;  %845 = vmatpush.bf16.msra.mxu1 %v1144_v7  ;;  %v1142_v11 = vld [vmem:[%s1893_s3 + $0x58] sm:$0xff] }
 0x41a   : > { %781 = vmin.xlane.f32.xlu0 %v780_v12 }
 0x41b   : > { %635 = vmatpush.bf16.msra.mxu3 %v1143_v9 }
 0x41c   : > { %v1746_v46 = vpop.eup %1227  ;;  %846 = vmatpush.bf16.msra.mxu1 %v1143_v9  ;;  %v737_v9 = vadd.f32 1.0, %v1698_v56 }
 0x41f   : > { %636 = vmatpush.bf16.msra.mxu3 %v1142_v11 }
 0x420   : > { %847 = vmatpush.bf16.msra.mxu1 %v1142_v11  ;;  %v770_v11 = vadd.f32 %v1746_v46, %v737_v9 }
 0x485   : > { %v443_v14 = vpop.xlane.xlu2 %442 }
 0x486   : > { %vm444_vm1 = vcmp.eq.f32.partialorder %v441_v5, %v443_v14  ;;  %v449_v23 = vcvt.f32.s32 %v443_v14  ;;  %v1136_v5 = vld [vmem:[%s1893_s3 + $0x28] sm:$0xff]  ;;  %v1141_v14 = vld [vmem:[%s1893_s3 + $0x50] sm:$0xff] }
 0x487   : > { %v445_v16 = vsel %vm444_vm1, %v440_v15, inf  ;;  %621 = vmatpush.bf16.msra.mxu2 %v1136_v5  ;;  %832 = vmatpush.bf16.msra.mxu0 %v1136_v5 }
 0x488   : > { %446 = vmin.xlane.f32.xlu1 %v445_v16  ;;  %v450_v26 = vshll.u32 %v449_v23, 16  ;;  %637 = vmatpush.bf16.msra.mxu3 %v1141_v14  ;;  %v1140_v23 = vld [vmem:[%s1893_s3 + $0x48] sm:$0xff] }
 0x489   : > { %848 = vmatpush.bf16.msra.mxu1 %v1141_v14 }
 0x48b   : > { %622 = vmatpush.bf16.msra.mxu2 %v1135_v6  ;;  %833 = vmatpush.bf16.msra.mxu0 %v1135_v6 }
 0x48c   : > { %638 = vmatpush.bf16.msra.mxu3 %v1140_v23 }
 0x48d   : > { %v782_v18 = vpop.xlane.xlu0 %781  ;;  %849 = vmatpush.bf16.msra.mxu1 %v1140_v23 }
 0x48e   : > { %vm783_vm2 = vcmp.eq.f32.partialorder %v780_v12, %v782_v18  ;;  %v788_v31 = vcvt.f32.s32 %v782_v18 }
 0x48f   : > { %v784_v20 = vsel %vm783_vm2, %v779_v19, inf  ;;  %623 = vmatpush.bf16.msra.mxu2 %v1134_v10  ;;  %834 = vmatpush.bf16.msra.mxu0 %v1134_v10 }
 0x490   : > { %785 = vmin.xlane.f32.xlu2 %v784_v20  ;;  %v789_v41 = vshll.u32 %v788_v31, 16 }
 0x493   : > { %624 = vmatpush.bf16.msra.mxu2 %v1133_v13  ;;  %835 = vmatpush.bf16.msra.mxu0 %v1133_v13 }
 0x497   : > { %625 = vmatpush.bf16.msra.mxu2 %v1132_v22  ;;  %836 = vmatpush.bf16.msra.mxu0 %v1132_v22 }
 0x49b   : > { %626 = vmatpush.bf16.msra.mxu2 %v1131_v24  ;;  %837 = vmatpush.bf16.msra.mxu0 %v1131_v24  ;;  %v1220_v24 = vld [vmem:[%s1895_s5] ss:$0 sm:$0xff] }
 0x4fb   : > { %v447_v25 = vpop.xlane.xlu1 %446 }
 0x4fc   : > { %v448_v27 = vcvt.f32.s32 %v447_v25  ;;  %v1139_v25 = vld [vmem:[%s1893_s3 + $0x40] sm:$0xff] }
 0x4fd   : > { %639 = vmatpush.bf16.msra.mxu3 %v1139_v25  ;;  %850 = vmatpush.bf16.msra.mxu1 %v1139_v25 }
 0x4fe   : > { %v451_v29 = vadd.s32 %v450_v26, %v448_v27  ;;  %v862_v26 = vld [vmem:[%s1891_s1 + $0x98] sm:$0xff]  ;;  %v861_v27 = vld [vmem:[%s1891_s1 + $0x70] sm:$0xff] }
 0x4ff   : > { %879 = vmatpush.msrb.mxu2 %v862_v26 }
 0x500   : > { %vm452_vm3 = vcmp.eq.s32.totalorder %v1611_v34, %v451_v29  ;;  %vm453_vm4 = vcmp.eq.s32.totalorder %v1614_v35, %v451_v29  ;;  %v859_v29 = vld [vmem:[%s1891_s1 + $0x20] sm:$0xff] }
 0x501   : > { %v456_v32 = vsel %vm452_vm3, -1e+30, %v1685_v47  ;;  %v457_v33 = vsel %vm453_vm4, -1e+30, %v1688_v48  ;;  %v1740_v37 = vsel %vm452_vm3, %v1732_v30, %v1691_v49  ;;  %v1744_v38 = vsel %vm453_vm4, %v1732_v30, %v1694_v50  ;;  %880 = vmatpush.msrb.mxu2 %v861_v27  ;;  %924 = vmatpush.bf16.msrb.mxu3 %v1148_v2 }
 0x502   : > { %v458_v39 = vmax.f32 %v456_v32, %v457_v33 }
 0x503   : > { %v786_v40 = vpop.xlane.xlu2 %785  ;;  %881 = vmatpush.msrb.mxu2 %v860_v28 }
 0x504   : > { %v787_v43 = vcvt.f32.s32 %v786_v40  ;;  %459 = vmax.xlane.f32.xlu0 %v458_v39 }
 0x505   : > { %882 = vmatpush.msrb.mxu2 %v859_v29 }
 0x506   : > { %v790_v45 = vadd.s32 %v789_v41, %v787_v43 }
 0x508   : > { %vm791_vm5 = vcmp.eq.s32.totalorder %v1611_v34, %v790_v45  ;;  %vm792_vm6 = vcmp.eq.s32.totalorder %v1614_v35, %v790_v45 }
 0x509   : > { %v1752_v47 = vsel %vm792_vm6, %v1746_v46, %v1712_v60  ;;  %v795_v48 = vsel %vm791_vm5, -1e+30, %v1715_v61  ;;  %v796_v49 = vsel %vm792_vm6, -1e+30, %v1718_v62  ;;  %v1758_v50 = vsel %vm791_vm5, %v1746_v46, %v1709_v59 }
 0x50a   : > { %v797_v51 = vmax.f32 %v795_v48, %v796_v49 }
 0x50c   : > { %798 = vmax.xlane.f32.xlu1 %v797_v51 }
 0x577   : > { %v1760_v52 = vpop.xlane.xlu0 %459 }
 0x578   : > { %vm465_vm7 = vcmp.eq.f32.partialorder %v456_v32, %v1760_v52  ;;  %vm466_vm8 = vcmp.eq.f32.partialorder %v457_v33, %v1760_v52  ;;  %v461_v31 = vsub.f32 %v1760_v52, %v1616_v36 }
 0x579   : > { %v467_v53 = vsel %vm465_vm7, %v1611_v34, 256  ;;  %v468_v54 = vsel %vm466_vm8, %v1614_v35, 256 }
 0x57a   : > { %vm469_vm9 = vcmp.lt.s32.totalorder %v467_v53, %v468_v54  ;;  %v462_v32 = vmul.f32 1.442695, %v461_v31 }
 0x57b   : > { %v470_v55 = vsel %vm469_vm9, %v467_v53, %v468_v54 }
 0x57c   : > { %v472_v57 = vshra.s32 %v470_v55, 16  ;;  %v471_v12 = vand.u32 65535, %v470_v55  ;;  %1229 = vpow2.f32 %v462_v32 }
 0x57e   : > { %v474_v58 = vcvt.s32.f32 %v472_v57  ;;  %v473_v16 = vcvt.s32.f32 %v471_v12 }
 0x57f   : > { %v1766_v60 = vpop.xlane.xlu1 %798 }
 0x580   : > { %vm804_vm10 = vcmp.eq.f32.partialorder %v795_v48, %v1766_v60  ;;  %vm805_vm11 = vcmp.eq.f32.partialorder %v796_v49, %v1766_v60  ;;  %475 = vmin.xlane.f32.xlu2 %v474_v58  ;;  %v800_v39 = vsub.f32 %v1766_v60, %v1622_v42 }
 0x581   : > { %v806_v59 = vsel %vm804_vm10, %v1611_v34, 256  ;;  %v807_v61 = vsel %vm805_vm11, %v1614_v35, 256 }
 0x582   : > { %vm808_vm12 = vcmp.lt.s32.totalorder %v806_v59, %v807_v61  ;;  %v801_v45 = vmul.f32 1.442695, %v800_v39  ;;  %v1230_v49 = vpop.eup %1229 }
 0x583   : > { %v809_v62 = vsel %vm808_vm12, %v806_v59, %v807_v61 }
 0x584   : > { %v811_v63 = vshra.s32 %v809_v62, 16  ;;  %v810_v18 = vand.u32 65535, %v809_v62  ;;  %1231 = vpow2.f32 %v801_v45 }
 0x586   : > { %v813_v0 = vcvt.s32.f32 %v811_v63  ;;  %v812_v20 = vcvt.s32.f32 %v810_v18 }
 0x588   : > { %814 = vmin.xlane.f32.xlu0 %v813_v0 }
 0x58a   : > { %v1232_v60 = vpop.eup %1231 }
 0x58b   : > { %v803_v13 = vadd.f32 %v1232_v60, %v770_v11 }
 0x5f3   : > { %v476_v15 = vpop.xlane.xlu2 %475 }
 0x5f4   : > { %vm477_vm13 = vcmp.eq.f32.partialorder %v474_v58, %v476_v15  ;;  %v482_v33 = vcvt.f32.s32 %v476_v15 }
 0x5f5   : > { %v478_v17 = vsel %vm477_vm13, %v473_v16, inf }
 0x5f6   : > { %479 = vmin.xlane.f32.xlu1 %v478_v17  ;;  %v483_v41 = vshll.u32 %v482_v33, 16 }
 0x5fb   : > { %v815_v19 = vpop.xlane.xlu0 %814 }
 0x5fc   : > { %vm816_vm14 = vcmp.eq.f32.partialorder %v813_v0, %v815_v19  ;;  %v821_v51 = vcvt.f32.s32 %v815_v19 }
 0x5fd   : > { %v817_v21 = vsel %vm816_vm14, %v812_v20, inf }
 0x5fe   : > { %818 = vmin.xlane.f32.xlu2 %v817_v21  ;;  %v822_v42 = vshll.u32 %v821_v51, 16 }
 0x669   : > { %v480_v40 = vpop.xlane.xlu1 %479 }
 0x66a   : > { %v481_v43 = vcvt.f32.s32 %v480_v40 }
 0x66c   : > { %v484_v48 = vadd.s32 %v483_v41, %v481_v43 }
 0x66e   : > { %vm485_vm15 = vcmp.eq.s32.totalorder %v1611_v34, %v484_v48  ;;  %vm486_vm1 = vcmp.eq.s32.totalorder %v1614_v35, %v484_v48 }
 0x66f   : > { %v487_v53 = vsel %vm485_vm15, %v1230_v49, %v1740_v37  ;;  %v488_v36 = vsel %vm486_vm1, %v1230_v49, %v1744_v38 }
 0x670   : > { %v489_v52 = vpack.c.bf16 %v487_v53, %v487_v53  ;;  %v490_v54 = vpack.c.bf16 %v488_v36, %v488_v36 }
 0x671   : > { %v819_v55 = vpop.xlane.xlu2 %818 }
 0x672   : > { %v820_v57 = vcvt.f32.s32 %v819_v55  ;;  %627 = vmatmul.bf16.vlgmr.msra.gmra.mxu2 %v489_v52  ;;  %640 = vmatmul.bf16.vlgmr.msra.gmra.mxu3 %v490_v54 }
 0x674   : > { %v823_v58 = vadd.s32 %v822_v42, %v820_v57 }
 0x676   : > { %vm824_vm2 = vcmp.eq.s32.totalorder %v1611_v34, %v823_v58  ;;  %vm825_vm3 = vcmp.eq.s32.totalorder %v1614_v35, %v823_v58  ;;  %v1147_v35 = vld [vmem:[#allocation7] sm:$0xff] }
 0x677   : > { %v826_v59 = vsel %vm824_vm2, %v1232_v60, %v1758_v50  ;;  %v827_v37 = vsel %vm825_vm3, %v1232_v60, %v1752_v47  ;;  %925 = vmatpush.bf16.msrb.mxu3 %v1147_v35  ;;  %v1219_v47 = vld [vmem:[#allocation5 + $0x4] ss:$0 sm:$0xff] }
 0x678   : > { %v828_v61 = vpack.c.bf16 %v826_v59, %v826_v59  ;;  %v829_v38 = vpack.c.bf16 %v827_v37, %v827_v37 }
 0x67a   : > { %838 = vmatmul.bf16.vlgmr.msra.gmra.mxu0 %v828_v61  ;;  %851 = vmatmul.bf16.vlgmr.msra.gmra.mxu1 %v829_v38 }
 0x682   : > { %1117 = vmatmul.msk.f32.vlgmr.msrb.gmra.mxu2 %vm319_vm0, %v1577_v8  ;;  %v398_v8 = vadd.f32 1.0, %v1677_v44 }
 0x684   : > { %v431_v12 = vadd.f32 %v1732_v30, %v398_v8 }
 0x686   : > { %v464_v14 = vadd.f32 %v1230_v49, %v431_v12 }
 0x6f5   : > { %v628_v62 = vpop.f32.mrf.mxu2  ;;  %v641_v63 = vpop.f32.mrf.mxu3 }
 0x6f6   : > { %v642_v18 = vadd.f32 %v641_v63, %v628_v62 }
 0x6f7   : > { %v839_v0 = vpop.f32.mrf.mxu0  ;;  %v852_v1 = vpop.f32.mrf.mxu1 }
 0x6f8   : > { %v853_v17 = vadd.f32 %v852_v1, %v839_v0 }
 0x6fd   : > { %v630_v34 = vpop.f32.mrf.mxu2  ;;  %v643_v3 = vpop.f32.mrf.mxu3 }
 0x6ff   : > { %v841_v4 = vpop.f32.mrf.mxu0  ;;  %v854_v50 = vpop.f32.mrf.mxu1 }
 0x705   : > { %v884_v5 = vpop.f32.mrf.mxu2 }
 0x706   : > { %v885_v7 = vadd.f32 %v1219_v47, %v884_v5 }
 0x708   : > { %v887_v6 = vsub.f32 0.0, %v885_v7 }
 0x70a   : > { %v888_v10 = vmul.f32 1.442695, %v887_v6 }
 0x70c   : > { %1233 = vpow2.f32 %v888_v10 }
 0x70d   : > { %1235 = vrcp.f32 %v803_v13 }
 0x70e   : > { %1237 = vrcp.f32 %v464_v14 }
 0x712   : > { %v1234_v15 = vpop.eup %1233 }
 0x713   : > { %v890_v16 = vadd.f32 1.0, %v1234_v15  ;;  %v1236_v56 = vpop.eup %1235 }
 0x714   : > { %v857_v19 = vmul.f32 %v1236_v56, %v853_v17  ;;  %v1238_v20 = vpop.eup %1237 }
 0x715   : > { %1239 = vrcp.f32 %v890_v16  ;;  %v646_v44 = vmul.f32 %v1238_v20, %v642_v18 }
 0x717   : > { %v858_v46 = vadd.f32 %v857_v19, %v646_v44 }
 0x71b   : > { %v1240_v21 = vpop.eup %1239 }
 0x71c   : > { %v892_v22 = vmul.f32 %v1240_v21, %v885_v7 }
 0x71e   : > { %v893_v30 = vmul.f32 %v892_v22, %v858_v46 }
 0x720   : > { %v894_v23 = vpack.c.bf16 %v893_v30, %v893_v30 }
 0x722   : > { %1126 = vmatmul.msk.bf16.vlgmr.msrb.gmra.mxu3 %vm319_vm0, %v894_v23 }
 0x7a5   : > { %v927_v25 = vpop.f32.mrf.mxu3 }
 0x7a6   : > { %v928_v26 = vadd.f32 %v1220_v24, %v927_v25 }
 0x7a8   : > { %931 = vst.msk [vmem:[%s299_s14] sm:$0xff] %vm319_vm0, %v928_v26 }
 0x7a9   : > { %1358 = shalt.err (!%p1355_p11)
}
 0x7aa   : > { %1159 = dma.vmem_to_hbm [thread:$0]  (%p1512_p5), %s946_s15, 128, %s948_s16, %s933_s25  }
 0x7ad   : > { %v929_v27 = vpop.f32.mrf.mxu3 }
 0x7ae PF: > { %s959_s30 = sand.u32 1, %s1389_s21   ;;  %p1902_p12 = scmp.ge.s32.totalorder %s1401_s24, 2 }
 0x7af   : > { %s960_s11 = scalar_lea.sflag [#allocation4], %s959_s30 }
 0x7b0   : > { %p1173_p13 = pnand %p1902_p12, %p1478_p6 }
 0x7b2   : > { %p1174_p0 = pneg %p1173_p13 }
 0x7b4   : > { %1384 = dma.done.wait (%p1174_p0), %s960_s11, 128  }
 0x7b5   : > { %1386 = vsyncadd (%p1174_p0), %s960_s11, 4294967168  ;;  %p20_p3 = scmp.ge.s32.totalorder %s1499_s18, 4   ;;  %s1903_s21 = smov %s1393_s22 }
 0x7b6   : > { %s1904_s22 = smov %s1397_s23  ;;  %s1905_s23 = smov %s1508_s26 }
 0x7b7   : > { %s1906_s24 = smov %s1499_s18  ;;  %22 = sbr.rel (!%p20_p3) target bundleno = 6 (0x6), region = 97 }
 0x7bc   :  { %966 = vsyncpa [#allocation3], 1 }
 0x7bd   :  { %968 = vsyncpa [#allocation3 + $0x1], 1 }
 0x7be   :  { %969 = vsyncpa [#allocation6], 1 }
 0x7bf   :  { %970 = vsyncpa [#allocation4], 1 }
 0x7c0   :  { %972 = vsyncpa [#allocation4 + $0x1], 1 }

</bundles_post_ra>
